<compile_context>
chip_gen: v6e
topology: v6e:2x2x1
jax: 0.10.0
libtpu: 0.0.40
codegen_flags: <defaults>
</compile_context>

<pallas_src>
import numpy as np
import jax
import jax.numpy as jnp
from jax import lax
from jax.experimental import pallas as pl
from jax.experimental.pallas import tpu as pltpu

EPS = 1e-5
HIGH = jax.lax.Precision.HIGHEST   # used only by the pure-JAX reference
CO_PAD = 128                       # lane-dense padded output-channel count


def _round_up(x, m):
    return ((x + m - 1) // m) * m


# --------------------------------------------------------------------------
# Kernel A: fused z-branch + x-branch 3x3 valid conv as im2col matmuls.
#   BN scale is pre-folded into the weights; kernel does matmul + bias + ReLU.
#   Both branches' conv weights are selected per M-tile via a scalar-prefetch
#   index (z rows and x rows are concatenated along M, each padded to tm).
# --------------------------------------------------------------------------
def conv3x3_bias_relu(taps, wsel, w_all, b_all, tm):
    # taps : (Mp, 9*Cin) bf16   im2col rows (z region ++ x region, each tm-padded)
    # wsel : (Mp//tm,)    i32   per-tile weight selector (0 = z/conv_kernel, 1 = x)
    # w_all: (2, 9*Cin, C2) bf16  BN-scale-folded conv weights (C2 = 2*hidden)
    # b_all: (2, 1, C2)  f32    folded BN bias
    Mp, K9 = taps.shape
    C2 = w_all.shape[2]

    def kernel(wsel_ref, t_ref, w_ref, b_ref, o_ref):
        del wsel_ref  # only used by the index_maps
        acc = jnp.dot(t_ref[...], w_ref[0], preferred_element_type=jnp.float32)
        o_ref[...] = jnp.maximum(acc + b_ref[0], 0.0).astype(o_ref.dtype)

    return pl.pallas_call(
        kernel,
        out_shape=jax.ShapeDtypeStruct((Mp, C2), jnp.bfloat16),
        grid_spec=pltpu.PrefetchScalarGridSpec(
            num_scalar_prefetch=1,
            grid=(Mp // tm,),
            in_specs=[
                pl.BlockSpec((tm, K9), lambda i, sel: (i, 0)),
                pl.BlockSpec((1, K9, C2), lambda i, sel: (sel[i], 0, 0)),
                pl.BlockSpec((1, 1, C2), lambda i, sel: (sel[i], 0, 0)),
            ],
            out_specs=pl.BlockSpec((tm, C2), lambda i, sel: (i, 0)),
        ),
        compiler_params=pltpu.CompilerParams(
            dimension_semantics=("parallel",),
            vmem_limit_bytes=32 * 1024 * 1024,   # headroom for tm=512 double-buffering
        ),
    )(wsel, taps, w_all, b_all)


# --------------------------------------------------------------------------
# Kernel B+C (fused): depthwise cross correlation + head
#   head = 1x1 conv (BN scale folded) + bias + ReLU + 1x1 conv (+bias)
#   grid = (batch, groups): groups=2 splits the independent cls / loc halves
#   (block-diagonal head) so both v7x TensorCores get work even at B=1.
# --------------------------------------------------------------------------
def xcorr_head_pallas(xs, zk, w1, b1, w2, b2, groups):
    # xs : (B, Hx, Wx, C2) bf16 "search" features,  zk : (B, Hz, Wz, C2) bf16 template
    # w1 : (G, Ch, Ch) bf16 head 1x1 conv with folded BN scale, b1 : (G, 1, Ch) f32
    # w2 : (G, Ch, CO_PAD) bf16 (real channels in the leading cols), b2 : (G, 1, CO_PAD)
    B, Hx, Wx, C2 = xs.shape
    _, Hz, Wz, _ = zk.shape
    Ho, Wo = Hx - Hz + 1, Wx - Wz + 1
    Wp = _round_up(Wo, 8)            # 8-aligned (sublane) row pitch in the feat scratch
    Mo = Ho * Wp
    Ch = C2 // groups
    Co = w2.shape[2]

    def kernel(x_ref, z_ref, w1_ref, b1_ref, w2_ref, b2_ref, o_ref, feat_ref):
        # ---- depthwise x-corr, one output row per fori_loop iteration ----
        def oy_body(oy, carry):
            row = jnp.zeros((Wo, Ch), jnp.float32)
            for dy in range(Hz):                      # small static unroll (Hz*Wz taps)
                for dx in range(Wz):
                    # direct VMEM window load (shift handled in the vld path, not vregs)
                    xw = x_ref[0, oy + dy, dx:dx + Wo, :].astype(jnp.float32)
                    # per-tap load each iteration (no big hoisted tap set -> no spills)
                    zt = z_ref[0, dy, dx:dx + 1, :].astype(jnp.float32)
                    row = row + xw * zt
            if Wp > Wo:
                # write the full 8-aligned slab (pad sublanes zeroed in the same store),
                # so the scratch never needs a separate bulk zero.
                row = jnp.concatenate(
                    [row, jnp.zeros((Wp - Wo, Ch), jnp.float32)], axis=0)
            feat_ref[pl.ds(pl.multiple_of(oy * Wp, 8), Wp), :] = row
            return carry

        lax.fori_loop(0, Ho, oy_body, 0)

        # ---- fused head: 1x1 conv (+folded BN) + ReLU + 1x1 conv + bias ----
        h = jnp.dot(feat_ref[...].astype(jnp.bfloat16), w1_ref[0],
                    preferred_element_type=jnp.float32)
        h = jnp.maximum(h + b1_ref[0], 0.0)
        o_ref[0, 0] = jnp.dot(h.astype(jnp.bfloat16), w2_ref[0],
                              preferred_element_type=jnp.float32) + b2_ref[0]

    return pl.pallas_call(
        kernel,
        out_shape=jax.ShapeDtypeStruct((B, groups, Mo, Co), jnp.float32),
        grid_spec=pltpu.PrefetchScalarGridSpec(
            num_scalar_prefetch=0,
            grid=(B, groups),
            in_specs=[
                pl.BlockSpec((1, Hx, Wx, Ch), lambda b, g: (b, 0, 0, g)),
                pl.BlockSpec((1, Hz, Wz, Ch), lambda b, g: (b, 0, 0, g)),
                pl.BlockSpec((1, Ch, Ch), lambda b, g: (g, 0, 0)),
                pl.BlockSpec((1, 1, Ch), lambda b, g: (g, 0, 0)),
                pl.BlockSpec((1, Ch, Co), lambda b, g: (g, 0, 0)),
                pl.BlockSpec((1, 1, Co), lambda b, g: (g, 0, 0)),
            ],
            out_specs=pl.BlockSpec((1, 1, Mo, Co), lambda b, g: (b, g, 0, 0)),
            scratch_shapes=[pltpu.VMEM((Mo, Ch), jnp.float32)],
        ),
        compiler_params=pltpu.CompilerParams(
            dimension_semantics=("parallel", "parallel")),
    )(xs, zk, w1, b1, w2, b2)


# --------------------------------------------------------------------------
# Glue: im2col, fused-conv M layout, full forward
# --------------------------------------------------------------------------
def extract_taps_flat(x_nhwc, k=3):
    B, H, W, C = x_nhwc.shape
    Ho, Wo = H - k + 1, W - k + 1
    cols = [x_nhwc[:, dy:dy + Ho, dx:dx + Wo, :] for dy in range(k) for dx in range(k)]
    taps = jnp.concatenate(cols, axis=-1).reshape(B * Ho * Wo, k * k * C)
    return taps, (Ho, Wo)


def depthwise_ban_forward(z_f, x_f, p, tm=512):
    # z_f (template): (B, Cin, Hz, Wz) NCHW ; x_f (search): (B, Cin, Hx, Wx) NCHW
    B = z_f.shape[0]
    zf = jnp.transpose(z_f, (0, 2, 3, 1)).astype(jnp.bfloat16)
    xf = jnp.transpose(x_f, (0, 2, 3, 1)).astype(jnp.bfloat16)

    z_taps, (Hz2, Wz2) = extract_taps_flat(zf)
    x_taps, (Hx2, Wx2) = extract_taps_flat(xf)
    C2 = p['w_conv'].shape[2]
    Mz, Mx = z_taps.shape[0], x_taps.shape[0]

    # One fused conv call: z rows then x rows, each region padded to a tile multiple
    # so a tile never straddles the weight switch (weight chosen per-tile via wsel).
    tm_eff = min(tm, _round_up(max(Mz, Mx), 8))
    Mzp, Mxp = _round_up(Mz, tm_eff), _round_up(Mx, tm_eff)
    taps = jnp.concatenate([
        jnp.pad(z_taps, ((0, Mzp - Mz), (0, 0))),
        jnp.pad(x_taps, ((0, Mxp - Mx), (0, 0))),
    ], axis=0)
    wsel = jnp.asarray(
        np.array([0] * (Mzp // tm_eff) + [1] * (Mxp // tm_eff), dtype=np.int32))

    conv_out = conv3x3_bias_relu(taps, wsel, p['w_conv'], p['b_conv'], tm_eff)
    zk = conv_out[:Mz].reshape(B, Hz2, Wz2, C2)
    xs = conv_out[Mzp:Mzp + Mx].reshape(B, Hx2, Wx2, C2)

    out = xcorr_head_pallas(xs, zk, p['w1'], p['b1'], p['w2'], p['b2'], p['groups'])

    Ho, Wo = Hx2 - Hz2 + 1, Wx2 - Wz2 + 1
    Wp = _round_up(Wo, 8)
    out = out.reshape(B, p['groups'], Ho, Wp, CO_PAD)[:, :, :, :Wo, :]
    co_c, co_l = p['cls_co'], p['loc_co']
    if p['groups'] == 2:
        cls = out[:, 0, :, :, :co_c]
        loc = out[:, 1, :, :, :co_l]
    else:
        cls = out[:, 0, :, :, :co_c]
        loc = out[:, 0, :, :, co_c:co_c + co_l]
    cls = jnp.transpose(cls, (0, 3, 1, 2))   # NCHW
    loc = jnp.transpose(loc, (0, 3, 1, 2))   # NCHW
    return cls, loc


# --------------------------------------------------------------------------
# Deterministic parameter init (PyTorch layouts) + fused kernel-layout transform
# --------------------------------------------------------------------------
def init_torch_params(key, in_ch, hidden, out_ch):
    keys = jax.random.split(key, 8)

    def conv_w(k, o, i, kh, kw):
        fan_in = i * kh * kw
        return jax.random.normal(k, (o, i, kh, kw), jnp.float32) / np.sqrt(fan_in)

    def bn_params(k, c):
        k1, k2, k3, k4 = jax.random.split(k, 4)
        gamma = 1.0 + 0.1 * jax.random.normal(k1, (c,), jnp.float32)
        beta = 0.1 * jax.random.normal(k2, (c,), jnp.float32)
        mean = 0.1 * jax.random.normal(k3, (c,), jnp.float32)
        var = jax.random.uniform(k4, (c,), jnp.float32, minval=0.5, maxval=1.5)
        return (gamma, beta, mean, var)

    return dict(
        wk=conv_w(keys[0], hidden, in_ch, 3, 3), bnk=bn_params(keys[1], hidden),
        ws=conv_w(keys[2], hidden, in_ch, 3, 3), bns=bn_params(keys[3], hidden),
        w1=conv_w(keys[4], hidden, hidden, 1, 1), bnh=bn_params(keys[5], hidden),
        w2=conv_w(keys[6], out_ch, hidden, 1, 1),
        b2=0.1 * jax.random.normal(keys[7], (out_ch,), jnp.float32),
    )


def to_kernel_params(tp_cls, tp_loc, branch_parallel=None):
    def taps_w(w):  # (O, I, 3, 3) -> (9*I, O), tap order (dy, dx) row-major, ch minor
        o, i = w.shape[0], w.shape[1]
        return jnp.transpose(w, (2, 3, 1, 0)).reshape(9 * i, o)

    def fold(bn):
        g, b, m, v = bn
        s = g / jnp.sqrt(v + EPS)
        return s, b - m * s

    h = tp_cls['w1'].shape[0]
    co_c = tp_cls['w2'].shape[0]
    co_l = tp_loc['w2'].shape[0]
    if branch_parallel is None:
        # channel split needs lane-dense (multiple-of-128) per-branch blocks
        branch_parallel = (h % 128 == 0)
    G = 2 if branch_parallel else 1

    ks_c, kb_c = fold(tp_cls['bnk']); ks_l, kb_l = fold(tp_loc['bnk'])
    ss_c, sb_c = fold(tp_cls['bns']); ss_l, sb_l = fold(tp_loc['bns'])
    hs_c, hb_c = fold(tp_cls['bnh']); hs_l, hb_l = fold(tp_loc['bnh'])

    # 3x3 conv weights: fold BN scale into output-channel columns (f32), then bf16.
    wk = jnp.concatenate([taps_w(tp_cls['wk']) * ks_c[None, :],
                          taps_w(tp_loc['wk']) * ks_l[None, :]], axis=1)
    ws = jnp.concatenate([taps_w(tp_cls['ws']) * ss_c[None, :],
                          taps_w(tp_loc['ws']) * ss_l[None, :]], axis=1)
    w_conv = jnp.stack([wk, ws]).astype(jnp.bfloat16)             # (2, 9*Cin, 2h)
    b_conv = jnp.stack([jnp.concatenate([kb_c, kb_l])[None, :],
                        jnp.concatenate([sb_c, sb_l])[None, :]])  # (2, 1, 2h) f32

    # head 1x1 convs (w1 columns carry the folded BN scale)
    w1_c = jnp.transpose(tp_cls['w1'][:, :, 0, 0]) * hs_c[None, :]   # (h, h)
    w1_l = jnp.transpose(tp_loc['w1'][:, :, 0, 0]) * hs_l[None, :]
    w2_c = jnp.transpose(tp_cls['w2'][:, :, 0, 0])                   # (h, co_c)
    w2_l = jnp.transpose(tp_loc['w2'][:, :, 0, 0])                   # (h, co_l)

    if G == 2:
        w1 = jnp.stack([w1_c, w1_l])                                  # (2, h, h)
        b1 = jnp.stack([hb_c[None, :], hb_l[None, :]])                # (2, 1, h)
        w2 = jnp.zeros((2, h, CO_PAD), jnp.float32)
        w2 = w2.at[0, :, :co_c].set(w2_c).at[1, :, :co_l].set(w2_l)
        b2 = jnp.zeros((2, 1, CO_PAD), jnp.float32)
        b2 = b2.at[0, 0, :co_c].set(tp_cls['b2']).at[1, 0, :co_l].set(tp_loc['b2'])
    else:
        w1 = jnp.zeros((1, 2 * h, 2 * h), jnp.float32)                # block-diagonal
        w1 = w1.at[0, :h, :h].set(w1_c).at[0, h:, h:].set(w1_l)
        b1 = jnp.concatenate([hb_c, hb_l])[None, None, :]             # (1, 1, 2h)
        w2 = jnp.zeros((1, 2 * h, CO_PAD), jnp.float32)
        w2 = w2.at[0, :h, :co_c].set(w2_c).at[0, h:, co_c:co_c + co_l].set(w2_l)
        b2 = jnp.zeros((1, 1, CO_PAD), jnp.float32)
        b2 = b2.at[0, 0, :co_c].set(tp_cls['b2']).at[0, 0, co_c:co_c + co_l].set(tp_loc['b2'])

    return dict(
        w_conv=w_conv, b_conv=b_conv,
        w1=w1.astype(jnp.bfloat16), b1=b1,
        w2=w2.astype(jnp.bfloat16), b2=b2,
        cls_co=co_c, loc_co=co_l, groups=G, hidden=h,
    )


# --------------------------------------------------------------------------
# Pure-JAX reference (mirrors the PyTorch module, eval-mode BN) for validation
# --------------------------------------------------------------------------
def _bn_ref(y, bn):
    g, b, m, v = bn
    return (y - m[None, :, None, None]) / jnp.sqrt(v[None, :, None, None] + EPS) \
        * g[None, :, None, None] + b[None, :, None, None]


def _xcorr_depthwise_ref(x, kernel):
    B, C, H, W = x.shape
    x2 = x.reshape(1, B * C, H, W)
    k2 = kernel.reshape(B * C, 1, kernel.shape[2], kernel.shape[3])
    out = lax.conv_general_dilated(x2, k2, (1, 1), 'VALID',
                                   dimension_numbers=('NCHW', 'OIHW', 'NCHW'),
                                   feature_group_count=B * C, precision=HIGH)
    return out.reshape(B, C, out.shape[2], out.shape[3])


def ref_xcorr_forward(z_f, x_f, tp):
    def conv_bn_relu(x, w, bn):
        y = lax.conv_general_dilated(x, w, (1, 1), 'VALID',
                                     dimension_numbers=('NCHW', 'OIHW', 'NCHW'),
                                     precision=HIGH)
        return jnp.maximum(_bn_ref(y, bn), 0.0)

    zk = conv_bn_relu(z_f, tp['wk'], tp['bnk'])
    xs = conv_bn_relu(x_f, tp['ws'], tp['bns'])
    feat = _xcorr_depthwise_ref(xs, zk)
    h = jnp.einsum('bchw,oc->bohw', feat, tp['w1'][:, :, 0, 0], precision=HIGH)
    h = jnp.maximum(_bn_ref(h, tp['bnh']), 0.0)
    out = jnp.einsum('bchw,oc->bohw', h, tp['w2'][:, :, 0, 0], precision=HIGH) \
        + tp['b2'][None, :, None, None]
    return out


if __name__ == "__main__":
    key = jax.random.PRNGKey(0)
    kz, kx, kc, kl = jax.random.split(key, 4)

    # Small shapes consistent with the module; hidden=128 exercises the
    # branch-parallel (cls/loc split) grid path used at production sizes.
    B, Cin, hidden = 2, 8, 128
    z_f = jax.random.normal(kz, (B, Cin, 8, 8), jnp.float32)     # template features
    x_f = jax.random.normal(kx, (B, Cin, 16, 16), jnp.float32)   # search features

    tp_cls = init_torch_params(kc, Cin, hidden, 2)   # cls_out_channels = 2
    tp_loc = init_torch_params(kl, Cin, hidden, 4)   # loc out = 4
    params = to_kernel_params(tp_cls, tp_loc)

    cls_out, loc_out = depthwise_ban_forward(z_f, x_f, params)
    jax.block_until_ready((cls_out, loc_out))

    cls_ref = ref_xcorr_forward(z_f, x_f, tp_cls)
    loc_ref = ref_xcorr_forward(z_f, x_f, tp_loc)
    # bf16 MXU operands + bf16 inter-kernel activations vs an f32 HIGHEST reference
    # -> bf16-level tolerance at hidden=128 accumulation lengths.
    np.testing.assert_allclose(np.asarray(cls_out), np.asarray(cls_ref), rtol=5e-2, atol=3e-1)
    np.testing.assert_allclose(np.asarray(loc_out), np.asarray(loc_ref), rtol=5e-2, atol=3e-1)
    assert cls_out.shape == (B, 2, 9, 9) and loc_out.shape == (B, 4, 9, 9)

    print("KERNEL_OK")
</pallas_src>

<mosaic_0001>
module attributes {stable_mosaic.version = 11 : i64} {
  func.func @kernel(%arg0: i32, %arg1: memref<2xi32, #tpu.memory_space<smem>>, %arg2: memref<392x72xbf16, #tpu.memory_space<vmem>>, %arg3: memref<1x72x256xbf16, #tpu.memory_space<vmem>>, %arg4: memref<1x1x256xf32, #tpu.memory_space<vmem>>, %arg5: memref<392x256xbf16, #tpu.memory_space<vmem>>) attributes {dimension_semantics = [#tpu.dimension_semantics<parallel>], iteration_bounds = array<i64: 2>, scalar_prefetch = 1 : i64, scratch_operands = 0 : i64, tpu.core_type = #tpu.core_type<tc>, window_params = [{transform_indices = @transform_0, window_bounds = array<i64: 392, 72>}, {transform_indices = @transform_1, window_bounds = array<i64: 1, 72, 256>}, {transform_indices = @transform_2, window_bounds = array<i64: 1, 1, 256>}, {transform_indices = @transform_3, window_bounds = array<i64: 392, 256>}]} {
    %c0 = arith.constant 0 : index
    %c0_0 = arith.constant 0 : index
    %0 = vector.load %arg2[%c0, %c0_0] : memref<392x72xbf16, #tpu.memory_space<vmem>>, vector<392x72xbf16>
    %c0_1 = arith.constant 0 : index
    %c0_2 = arith.constant 0 : index
    %c0_3 = arith.constant 0 : index
    %1 = vector.load %arg3[%c0_1, %c0_2, %c0_3] : memref<1x72x256xbf16, #tpu.memory_space<vmem>>, vector<1x72x256xbf16>
    %2 = vector.shape_cast %1 : vector<1x72x256xbf16> to vector<72x256xbf16>
    %cst = arith.constant dense<0.000000e+00> : vector<392x256xf32>
    %3 = tpu.matmul %0, %2, %cst {dimension_numbers = #tpu.dot_dimension_numbers<[1], [0], [0], [1], [0, 0, 1, 1], [], []>} : vector<392x72xbf16>, vector<72x256xbf16>, vector<392x256xf32> -> vector<392x256xf32>
    %c0_4 = arith.constant 0 : index
    %c0_5 = arith.constant 0 : index
    %c0_6 = arith.constant 0 : index
    %4 = vector.load %arg4[%c0_4, %c0_5, %c0_6] : memref<1x1x256xf32, #tpu.memory_space<vmem>>, vector<1x1x256xf32>
    %5 = vector.shape_cast %4 : vector<1x1x256xf32> to vector<1x256xf32>
    %6 = vector.broadcast %5 : vector<1x256xf32> to vector<392x256xf32>
    %7 = arith.addf %3, %6 : vector<392x256xf32>
    %cst_7 = arith.constant 0.000000e+00 : f32
    %8 = vector.broadcast %cst_7 : f32 to vector<392x256xf32>
    %9 = arith.maximumf %7, %8 : vector<392x256xf32>
    %10 = arith.truncf %9 : vector<392x256xf32> to vector<392x256xbf16>
    %c0_8 = arith.constant 0 : index
    %c0_9 = arith.constant 0 : index
    %11 = vector.load %arg5[%c0_8, %c0_9] : memref<392x256xbf16, #tpu.memory_space<vmem>>, vector<392x256xbf16>
    tpu.vector_store %arg5[%c0_8, %c0_9], %10 {strides = array<i32>} : memref<392x256xbf16, #tpu.memory_space<vmem>>, vector<392x256xbf16>,
    return
  }
  func.func @transform_0(%arg0: i32, %arg1: memref<2xi32, #tpu.memory_space<smem>>) -> (i32, i32) {
    %c0_i32 = arith.constant 0 : i32
    %c0_i32_0 = arith.constant 0 : i32
    return %arg0, %c0_i32 : i32, i32
  }
  func.func @transform_1(%arg0: i32, %arg1: memref<2xi32, #tpu.memory_space<smem>>) -> (i32, i32, i32) {
    %0 = arith.index_cast %arg0 : i32 to index
    %1 = memref.load %arg1[%0] : memref<2xi32, #tpu.memory_space<smem>>
    %c0_i32 = arith.constant 0 : i32
    %c0_i32_0 = arith.constant 0 : i32
    %c0_i32_1 = arith.constant 0 : i32
    return %1, %c0_i32, %c0_i32_0 : i32, i32, i32
  }
  func.func @transform_2(%arg0: i32, %arg1: memref<2xi32, #tpu.memory_space<smem>>) -> (i32, i32, i32) {
    %0 = arith.index_cast %arg0 : i32 to index
    %1 = memref.load %arg1[%0] : memref<2xi32, #tpu.memory_space<smem>>
    %c0_i32 = arith.constant 0 : i32
    %c0_i32_0 = arith.constant 0 : i32
    %c0_i32_1 = arith.constant 0 : i32
    return %1, %c0_i32, %c0_i32_0 : i32, i32, i32
  }
  func.func @transform_3(%arg0: i32, %arg1: memref<2xi32, #tpu.memory_space<smem>>) -> (i32, i32) {
    %c0_i32 = arith.constant 0 : i32
    %c0_i32_0 = arith.constant 0 : i32
    return %arg0, %c0_i32 : i32, i32
  }
}

</mosaic_0001>

<bundles_post_ra>
// kernel: tpu_custom_call.1
= control target key start
LH: loop header
LB: loop body
LE: loop exit
PB: predicated region body
PF: predicated region fallthrough
CT: control target
= control target key end

     0   :  { %s2097_s0 = inlined_call_operand.vmem [shape: s32[2], index: 0, kind: input, shape index: {}]   ;;  %s2098_s1 = inlined_call_operand.vmem [shape: bf16[784,72], index: 1, kind: input, shape index: {}]   ;;  %s2099_s2 = inlined_call_operand.vmem [shape: bf16[2,72,256], index: 2, kind: input, shape index: {}]   ;;  %s2100_s3 = inlined_call_operand.vmem [shape: f32[2,1,256], index: 3, kind: input, shape index: {}]   ;;  %s2101_s4 = inlined_call_operand.hbm [shape: bf16[784,256], index: 4, kind: output, shape index: {}]  }
   0x1   :  { %s9_s17 = sshll.u32 %s2097_s0, 4  ;;  %s10_s17 = int_to_ptr.vmem [resolvable:$true] %s9_s17 }
   0x2   :  { %s1644_s18 = scalar_lea.vmem %s10_s17, 16  ;;  %p1649_p1 = scmp.lt.s32.totalorder %s10_s17, %s10_s17 }
   0x3   :  { %p1645_p0 = scmp.ne.s32.totalorder %s10_s17, %s1644_s18  ;;  %p1650_p2 = scmp.lt.s32.totalorder %s1644_s18, %s1644_s18 }
   0x5   :  { %p1651_p3 = por %p1650_p2, %p1649_p1 }
   0x7   :  { %p1652_p4 = pnand %p1651_p3, %p1645_p0 }
   0x9   :  { %1655 = shalt.err (!%p1652_p4)  }
   0xa   :  { %s1720_s19 = smov [#allocation3]  }
   0xb   :  { %12 = dma.vmem_to_smem %s10_s17, 16, %s1720_s19, [#allocation2] }
   0xc   :  { %1698 = dma.done.wait [#allocation2], 16 }
   0xd   :  { %1699 = vsyncadd [#allocation2], 4294967280 }
   0xe   :  { %14 = sfence }
   0xf   :  { %15 = vsyncpa [#allocation5], 0 }
  0x10   :  { %17 = vsyncpa [#allocation5 + $0x1], 0  ;;  %s1753_s20 = smov 0   ;;  %s1755_s21 = smov 0  }
  0x11   :  { %s1757_s0 = smov 0   ;;  %s1759_s22 = smov 0  }
  0x12 LB: > { %s1774_s23 = sadd.s32 4294967295, %s1718_s22   ;;  %s1377_s24 = sadd.s32 4294967294, %s1718_s22   ;;  %s1718_s22 = sphi %s1759_s22, %s2107_s22   ;;  %s1714_s0 = sphi %s1757_s0, %s2106_s0   ;;  %s1710_s21 = sphi %s1755_s21, %s2105_s21   ;;  %s1706_s20 = sphi %s1753_s20, %s2104_s20  }
  0x13   : > { %s1778_s25 = sadd.s32 1, %s1718_s22   ;;  %s112_s26 = sadd.s32 1, %s1714_s0 }
  0x14   : > { %s109_s27 = ssub.s32 %s1718_s22, %s1778_s25  ;;  %p122_p5 = scmp.ne.s32.totalorder %s1714_s0, %s1710_s21 }
  0x15   : > { %p110_p6 = scmp.eq.s32.totalorder %s109_s27, 0  ;;  %p123_p7 = scmp.eq.s32.totalorder %s1774_s23, 1 }
  0x16   : > { %p128_p8 = scmp.ne.s32.totalorder %s1710_s21, %s1706_s20  ;;  %p129_p9 = scmp.eq.s32.totalorder %s1377_s24, 1 }
  0x17   : > { %s1789_s28 = scalar_select %p110_p6, %s1714_s0, %s112_s26  }
  0x18   : > { %p1791_p10 = por %p123_p7, %p122_p5  ;;  %p1795_p11 = por %p129_p9, %p128_p8 }
  0x19   : > { %p1380_p12 = scmp.ge.s32.totalorder %s1718_s22, 1  ;;  %p175_p13 = scmp.lt.s32.totalorder %s1718_s22, 3 }
  0x1b   : > { %p176_p0 = pnand %p1380_p12, %p175_p13 }
  0x1c   : > { %s216_s5 = sld [smem:[#allocation3 + %s1774_s23]] (!%p176_p0)  ;;  %s210_s6 = smul.u32 (!%p176_p0), 49, %s1774_s23 }
  0x1d   : > { %179 = sbr.rel (%p176_p0) target bundleno = 378 (0x17a), region = 32  ;;  %s223_s15 = sld [smem:[#allocation3 + %s1774_s23]] (!%p176_p0) }
  0x1e   : > { %p211_p1 = scmp.lt.s32.totalorder (!%p176_p0), %s210_s6, 97  ;;  %s207_s24 = sand.u32 (!%p176_p0), 1, %s1710_s21  }
  0x1f   : > { %s1560_s26 = smul.u32 (!%p176_p0), 392, %s207_s24 }
  0x21   : > { %s1905_s27 = scalar_lea.vmem (!%p176_p0), [#allocation4], %s1560_s26 }
  0x22   : > { %v1721_v0 = vmov 0   ;;  %s2109_s6 = smov (!%p211_p1, %s210_s6), 97  ;;  %p217_p2 = scmp.lt.s32.totalorder %s216_s5, 1  ;;  %vm545_vm0 = vcmask 1043456   ;;  %vm469_vm1 = vcmask 588800   ;;  %v291_v38 = vlaneseq }
  0x23   : > { %584 = vmatprep.mubr.bf16.mxu0 %v1721_v0  ;;  %714 = vmatprep.mubr.bf16.mxu1 %v1721_v0  ;;  %s1381_s7 = sshll.u32 %s2109_s6, 2  ;;  %p224_p3 = scmp.lt.s32.totalorder %s223_s15, 1 }
  0x24   : > { %s1808_s10 = scalar_lea.vmem %s2098_s1, %s1381_s7  ;;  %s2111_s5 = smov (!%p217_p2, %s216_s5), 1  ;;  %v292_v39 = vshrl.u32 %v291_v38, 7 }
  0x25   : > { %s1561_s11 = smul.u32 72, %s2111_s5  ;;  %v1619_v13 = vld [vmem:[%s1808_s10] sm:$0xff]   ;;  %v1620_v14 = vld [vmem:[%s1808_s10 + $0x68] sm:$0xff]   ;;  %v1622_v16 = vld [vmem:[%s1808_s10 + $0x70] sm:$0xff]   ;;  %s2113_s15 = smov (!%p224_p3, %s223_s15), 1 }
  0x26   : > { %v1621_v15 = vld [vmem:[%s1808_s10 + $0x8] sm:$0xff]   ;;  %v1623_v17 = vld [vmem:[%s1808_s10 + $0x10] sm:$0xff]   ;;  %v1624_v18 = vld [vmem:[%s1808_s10 + $0x78] sm:$0xff]   ;;  %s1383_s16 = sshll.u32 %s2113_s15, 1  ;;  %v293_v40 = vsub.s32 0, %v292_v39  ;;  %v297_v42 = vsub.s32 1, %v292_v39 }
  0x27   : > { %s221_s14 = scalar_lea.vmem %s2099_s2, %s1561_s11  ;;  %v1625_v19 = vld [vmem:[%s1808_s10 + $0x18] sm:$0xff]   ;;  %v1626_v20 = vld [vmem:[%s1808_s10 + $0x80] sm:$0xff]   ;;  %v1628_v22 = vld [vmem:[%s1808_s10 + $0x88] sm:$0xff]   ;;  %s227_s19 = scalar_lea.vmem %s2100_s3, %s1383_s16 }
  0x28   : > { %v288_v1 = vld [vmem:[%s221_s14 + $0x40] sm:$0xff]  ;;  %v1607_v4 = vld [vmem:[%s221_s14 + $0x34] ss:$8 sps:$4 sm:$0xff]   ;;  %v1609_v6 = vld [vmem:[%s221_s14 + $0x30] ss:$8 sps:$4 sm:$0xff]   ;;  %s1549_s5 = smul.u32 6272, %s1774_s23 }
  0x29   : > { %v1418_v2 = vcombine.high %v288_v1, %v288_v1  ;;  %v1417_v3 = vcombine.low %v288_v1, %v288_v1  ;;  %v1610_v7 = vld [vmem:[%s221_s14 + $0x24] ss:$8 sps:$4 sm:$0xff]   ;;  %v1612_v8 = vld [vmem:[%s221_s14 + $0x20] ss:$8 sps:$4 sm:$0xff]   ;;  %v1613_v9 = vld [vmem:[%s221_s14 + $0x14] ss:$8 sps:$4 sm:$0xff]  }
  0x2a   : > { %v1615_v10 = vld [vmem:[%s221_s14 + $0x10] ss:$8 sps:$4 sm:$0xff]   ;;  %v1616_v11 = vld [vmem:[%s221_s14 + $0x4] ss:$8 sps:$4 sm:$0xff]   ;;  %v1618_v12 = vld [vmem:[%s221_s14] ss:$8 sps:$4 sm:$0xff]   ;;  %s2050_s9 = scalar_lea.hbm %s2101_s4, %s1549_s5 }
  0x2b   : > { %1419 = vmatprep.subr.msk.bf16.mxu0 %vm545_vm0, %v1418_v2  ;;  %v547_v5 = vsel %vm545_vm0, %v1417_v3, 0  ;;  %1550 = vmatprep.subr.msk.bf16.mxu1 %vm545_vm0, %v1418_v2  ;;  %v1627_v21 = vld [vmem:[%s1808_s10 + $0x20] sm:$0xff]   ;;  %v1629_v23 = vld [vmem:[%s1808_s10 + $0x28] sm:$0xff]   ;;  %v1630_v24 = vld [vmem:[%s1808_s10 + $0x90] sm:$0xff]   ;;  %s1291_s6 = sshll.u32 %s1905_s27, 4  ;;  %s2057_s23 = scalar_lea.sflag [#allocation5], %s207_s24  ;;  %s2052_s6 = int_to_ptr.vmem [resolvable:$true] %s1291_s6 }
  0x2c   : > { %559 = vmatpush1.bf16.msra.mxu0 %v547_v5  ;;  %1555 = vmatpush1.bf16.msra.mxu1 %v547_v5  ;;  %v1631_v25 = vld [vmem:[%s1808_s10 + $0x30] sm:$0xff]   ;;  %v1632_v26 = vld [vmem:[%s1808_s10 + $0x98] sm:$0xff]   ;;  %v1634_v28 = vld [vmem:[%s1808_s10 + $0xa0] sm:$0xff]   ;;  %s1722_s11 = smov [#allocation4]  }
  0x2d   : > { %560 = vmatprep.subr.bf16.mxu0 %v1607_v4  ;;  %1551 = vmatprep.subr.bf16.mxu1 %v1607_v4  ;;  %v1633_v27 = vld [vmem:[%s1808_s10 + $0x38] sm:$0xff]   ;;  %v1635_v29 = vld [vmem:[%s1808_s10 + $0x40] sm:$0xff]   ;;  %v1636_v30 = vld [vmem:[%s1808_s10 + $0xa8] sm:$0xff]   ;;  %s1660_s12 = sshll.u32 %s1722_s11, 4  ;;  %s1661_s12 = int_to_ptr.vmem [resolvable:$false] %s1660_s12 }
  0x2e   : > { %v1637_v31 = vld [vmem:[%s1808_s10 + $0x48] sm:$0xff]   ;;  %v1638_v32 = vld [vmem:[%s1808_s10 + $0xb0] sm:$0xff]   ;;  %v1640_v34 = vld [vmem:[%s1808_s10 + $0xb8] sm:$0xff]   ;;  %s1662_s13 = scalar_lea.vmem %s1661_s12, 12544  ;;  %p1663_p7 = scmp.lt.s32.totalorder %s2052_s6, %s1661_s12 }
  0x2f   : > { %v1639_v33 = vld [vmem:[%s1808_s10 + $0x50] sm:$0xff]   ;;  %v1641_v35 = vld [vmem:[%s1808_s10 + $0x58] sm:$0xff]   ;;  %v1642_v36 = vld [vmem:[%s1808_s10 + $0xc0] ss:$0 sps:$4 sm:$0xff]  }
  0x30   : > { %561 = vmatpush1.bf16.msra.mxu0 %v1609_v6  ;;  %1556 = vmatpush1.bf16.msra.mxu1 %v1609_v6  ;;  %v1643_v37 = vld [vmem:[%s1808_s10 + $0x60] sm:$0xff]   ;;  %s1656_s10 = scalar_lea.vmem %s2052_s6, 6272 }
  0x31   : > { %562 = vmatprep.subr.bf16.mxu0 %v1610_v7  ;;  %1552 = vmatprep.subr.bf16.mxu1 %v1610_v7  ;;  %v289_v41 = vld [vmem:[%s227_s19] sm:$0x3]  ;;  %p1657_p4 = scmp.ne.s32.totalorder %s2052_s6, %s1656_s10  ;;  %p1664_p8 = scmp.lt.s32.totalorder %s1662_s13, %s1656_s10 }
  0x32   : > { %v1890_v43 = vrot.slane %v289_v41, %v293_v40  ;;  %v1893_v44 = vrot.slane %v289_v41, %v297_v42 }
  0x33   : > { %p1658_p5 = pnand %p1657_p4, %p1791_p10  ;;  %p1665_p9 = por %p1664_p8, %p1663_p7 }
  0x34   : > { %563 = vmatpush1.bf16.msra.mxu0 %v1612_v8  ;;  %1557 = vmatpush1.bf16.msra.mxu1 %v1612_v8 }
  0x35   : > { %564 = vmatprep.subr.bf16.mxu0 %v1613_v9  ;;  %1553 = vmatprep.subr.bf16.mxu1 %v1613_v9  ;;  %p1659_p6 = pneg %p1658_p5 }
  0x37   : > { %p1666_p12 = pnand %p1665_p9, %p1659_p6 }
  0x38   : > { %565 = vmatpush1.bf16.msra.mxu0 %v1615_v10  ;;  %1558 = vmatpush1.bf16.msra.mxu1 %v1615_v10 }
  0x39   : > { %566 = vmatprep.subr.bf16.mxu0 %v1616_v11  ;;  %1554 = vmatprep.subr.bf16.mxu1 %v1616_v11 }
  0x3c   : > { %567 = vmatpush1.bf16.msra.mxu0 %v1618_v12  ;;  %1559 = vmatpush1.bf16.msra.mxu1 %v1618_v12 }
  0x3f   : > { %1420 = vmatmul.mubr.msk.bf16.vlgmr.msra.gmra.mxu0 %vm469_vm1, %v1619_v13  ;;  %1433 = vmatmul.mubr.msk.bf16.vlgmr.msra.gmra.mxu1 %vm469_vm1, %v1620_v14 }
  0x40   : > { %594 = vmatprep.mubr.bf16.mxu0 %v1721_v0  ;;  %724 = vmatprep.mubr.bf16.mxu1 %v1721_v0 }
  0x47   : > { %1421 = vmatmul.mubr.msk.bf16.gmra.mxu0 %vm469_vm1, %v1621_v15  ;;  %1434 = vmatmul.mubr.msk.bf16.gmra.mxu1 %vm469_vm1, %v1622_v16 }
  0x48   : > { %604 = vmatprep.mubr.bf16.mxu0 %v1721_v0  ;;  %734 = vmatprep.mubr.bf16.mxu1 %v1721_v0 }
  0x4f   : > { %1422 = vmatmul.mubr.msk.bf16.gmra.mxu0 %vm469_vm1, %v1623_v17  ;;  %1435 = vmatmul.mubr.msk.bf16.gmra.mxu1 %vm469_vm1, %v1624_v18 }
  0x50   : > { %614 = vmatprep.mubr.bf16.mxu0 %v1721_v0  ;;  %744 = vmatprep.mubr.bf16.mxu1 %v1721_v0 }
  0x57   : > { %1423 = vmatmul.mubr.msk.bf16.gmra.mxu0 %vm469_vm1, %v1625_v19  ;;  %1436 = vmatmul.mubr.msk.bf16.gmra.mxu1 %vm469_vm1, %v1626_v20 }
  0x58   : > { %624 = vmatprep.mubr.bf16.mxu0 %v1721_v0  ;;  %754 = vmatprep.mubr.bf16.mxu1 %v1721_v0 }
  0x5f   : > { %1424 = vmatmul.mubr.msk.bf16.gmra.mxu0 %vm469_vm1, %v1627_v21  ;;  %1437 = vmatmul.mubr.msk.bf16.gmra.mxu1 %vm469_vm1, %v1628_v22 }
  0x60   : > { %634 = vmatprep.mubr.bf16.mxu0 %v1721_v0  ;;  %764 = vmatprep.mubr.bf16.mxu1 %v1721_v0 }
  0x67   : > { %1425 = vmatmul.mubr.msk.bf16.gmra.mxu0 %vm469_vm1, %v1629_v23  ;;  %1438 = vmatmul.mubr.msk.bf16.gmra.mxu1 %vm469_vm1, %v1630_v24 }
  0x68   : > { %644 = vmatprep.mubr.bf16.mxu0 %v1721_v0  ;;  %774 = vmatprep.mubr.bf16.mxu1 %v1721_v0 }
  0x6f   : > { %1426 = vmatmul.mubr.msk.bf16.gmra.mxu0 %vm469_vm1, %v1631_v25  ;;  %1439 = vmatmul.mubr.msk.bf16.gmra.mxu1 %vm469_vm1, %v1632_v26 }
  0x70   : > { %654 = vmatprep.mubr.bf16.mxu0 %v1721_v0  ;;  %784 = vmatprep.mubr.bf16.mxu1 %v1721_v0 }
  0x77   : > { %1427 = vmatmul.mubr.msk.bf16.gmra.mxu0 %vm469_vm1, %v1633_v27  ;;  %1440 = vmatmul.mubr.msk.bf16.gmra.mxu1 %vm469_vm1, %v1634_v28 }
  0x78   : > { %664 = vmatprep.mubr.bf16.mxu0 %v1721_v0  ;;  %794 = vmatprep.mubr.bf16.mxu1 %v1721_v0 }
  0x7f   : > { %1428 = vmatmul.mubr.msk.bf16.gmra.mxu0 %vm469_vm1, %v1635_v29  ;;  %1441 = vmatmul.mubr.msk.bf16.gmra.mxu1 %vm469_vm1, %v1636_v30 }
  0x80   : > { %674 = vmatprep.mubr.bf16.mxu0 %v1721_v0  ;;  %804 = vmatprep.mubr.bf16.mxu1 %v1721_v0 }
  0x87   : > { %1429 = vmatmul.mubr.msk.bf16.gmra.mxu0 %vm469_vm1, %v1637_v31  ;;  %1442 = vmatmul.mubr.msk.bf16.gmra.mxu1 %vm469_vm1, %v1638_v32 }
  0x88   : > { %684 = vmatprep.mubr.bf16.mxu0 %v1721_v0  ;;  %814 = vmatprep.mubr.bf16.mxu1 %v1721_v0 }
  0x8f   : > { %1430 = vmatmul.mubr.msk.bf16.gmra.mxu0 %vm469_vm1, %v1639_v33  ;;  %1443 = vmatmul.mubr.msk.bf16.gmra.mxu1 %vm469_vm1, %v1640_v34 }
  0x90   : > { %694 = vmatprep.mubr.bf16.mxu0 %v1721_v0  ;;  %824 = vmatprep.mubr.bf16.mxu1 %v1721_v0 }
  0x97   : > { %1431 = vmatmul.mubr.msk.bf16.gmra.mxu0 %vm469_vm1, %v1641_v35  ;;  %1444 = vmatmul.mubr.msk.bf16.gmra.mxu1 %vm469_vm1, %v1642_v36 }
  0x98   : > { %704 = vmatprep.mubr.bf16.mxu0 %v1721_v0 }
  0x9f   : > { %1432 = vmatmul.mubr.msk.bf16.gmra.mxu0 %vm469_vm1, %v1643_v37 }
  0xff   : > { %v586_v45 = vpop.f32.mrf.mxu0  ;;  %v716_v46 = vpop.f32.mrf.mxu1 }
 0x100   : > { %v587_v47 = vadd.f32 %v586_v45, %v1890_v43  ;;  %v717_v48 = vadd.f32 %v716_v46, %v1890_v43 }
 0x101   : > { %v588_v49 = vpop.f32.mrf.mxu0  ;;  %v718_v50 = vpop.f32.mrf.mxu1 }
 0x102   : > { %v589_v51 = vadd.f32 %v588_v49, %v1893_v44  ;;  %v885_v52 = vmax.f32 %v717_v48, 0.0  ;;  %v719_v53 = vadd.f32 %v718_v50, %v1893_v44  ;;  %v833_v54 = vmax.f32 %v587_v47, 0.0 }
 0x103   : > { %v590_v55 = vpop.f32.mrf.mxu0  ;;  %v720_v56 = vpop.f32.mrf.mxu1 }
 0x104   : > { %v834_v57 = vmax.f32 %v589_v51, 0.0  ;;  %v591_v58 = vadd.f32 %v590_v55, %v1890_v43  ;;  %v886_v59 = vmax.f32 %v719_v53, 0.0  ;;  %v721_v60 = vadd.f32 %v720_v56, %v1890_v43 }
 0x105   : > { %v592_v61 = vpop.f32.mrf.mxu0  ;;  %v722_v62 = vpop.f32.mrf.mxu1 }
 0x106   : > { %v1498_v63 = vpack.c.bf16 %v834_v57, %v833_v54  ;;  %v593_v0 = vadd.f32 %v592_v61, %v1893_v44  ;;  %v1524_v1 = vpack.c.bf16 %v886_v59, %v885_v52  ;;  %v887_v3 = vmax.f32 %v721_v60, 0.0 }
 0x107   : > { %v596_v2 = vpop.f32.mrf.mxu0  ;;  %v723_v4 = vadd.f32 %v722_v62, %v1893_v44  ;;  %v726_v5 = vpop.f32.mrf.mxu1  ;;  %v835_v6 = vmax.f32 %v591_v58, 0.0 }
 0x108   : > { %1227 = vst [vmem:[%s1905_s27] sm:$0xff] %v1498_v63  ;;  %v836_v7 = vmax.f32 %v593_v0, 0.0  ;;  %v597_v8 = vadd.f32 %v596_v2, %v1890_v43  ;;  %1253 = vst [vmem:[%s1905_s27 + $0xd0] sm:$0xff] %v1524_v1  ;;  %v727_v9 = vadd.f32 %v726_v5, %v1890_v43 }
 0x109   : > { %v598_v10 = vpop.f32.mrf.mxu0  ;;  %v888_v11 = vmax.f32 %v723_v4, 0.0  ;;  %v728_v12 = vpop.f32.mrf.mxu1 }
 0x10a   : > { %v1499_v13 = vpack.c.bf16 %v836_v7, %v835_v6  ;;  %v599_v14 = vadd.f32 %v598_v10, %v1893_v44  ;;  %v889_v17 = vmax.f32 %v727_v9, 0.0  ;;  %v729_v18 = vadd.f32 %v728_v12, %v1893_v44 }
 0x10b   : > { %v600_v15 = vpop.f32.mrf.mxu0  ;;  %v1525_v16 = vpack.c.bf16 %v888_v11, %v887_v3  ;;  %v730_v19 = vpop.f32.mrf.mxu1  ;;  %v837_v20 = vmax.f32 %v597_v8, 0.0 }
 0x10c   : > { %1228 = vst [vmem:[%s1905_s27 + $0x8] sm:$0xff] %v1499_v13  ;;  %v838_v21 = vmax.f32 %v599_v14, 0.0  ;;  %v601_v22 = vadd.f32 %v600_v15, %v1890_v43  ;;  %v731_v23 = vadd.f32 %v730_v19, %v1890_v43  ;;  %v890_v25 = vmax.f32 %v729_v18, 0.0 }
 0x10d   : > { %1254 = vst [vmem:[%s1905_s27 + $0xd8] sm:$0xff] %v1525_v16  ;;  %v602_v24 = vpop.f32.mrf.mxu0  ;;  %v732_v26 = vpop.f32.mrf.mxu1 }
 0x10e   : > { %v1500_v27 = vpack.c.bf16 %v838_v21, %v837_v20  ;;  %v603_v28 = vadd.f32 %v602_v24, %v1893_v44  ;;  %v1526_v30 = vpack.c.bf16 %v890_v25, %v889_v17  ;;  %v891_v31 = vmax.f32 %v731_v23, 0.0 }
 0x10f   : > { %v606_v29 = vpop.f32.mrf.mxu0  ;;  %v733_v32 = vadd.f32 %v732_v26, %v1893_v44  ;;  %v736_v33 = vpop.f32.mrf.mxu1  ;;  %v839_v34 = vmax.f32 %v601_v22, 0.0 }
 0x110   : > { %1229 = vst [vmem:[%s1905_s27 + $0x10] sm:$0xff] %v1500_v27  ;;  %v840_v35 = vmax.f32 %v603_v28, 0.0  ;;  %v607_v36 = vadd.f32 %v606_v29, %v1890_v43  ;;  %v737_v37 = vadd.f32 %v736_v33, %v1890_v43  ;;  %1255 = vst [vmem:[%s1905_s27 + $0xe0] sm:$0xff] %v1526_v30 }
 0x111   : > { %v608_v38 = vpop.f32.mrf.mxu0  ;;  %v892_v39 = vmax.f32 %v733_v32, 0.0  ;;  %v738_v40 = vpop.f32.mrf.mxu1 }
 0x112   : > { %v1501_v41 = vpack.c.bf16 %v840_v35, %v839_v34  ;;  %v609_v42 = vadd.f32 %v608_v38, %v1893_v44  ;;  %v893_v47 = vmax.f32 %v737_v37, 0.0  ;;  %v739_v48 = vadd.f32 %v738_v40, %v1893_v44 }
 0x113   : > { %v610_v45 = vpop.f32.mrf.mxu0  ;;  %v1527_v46 = vpack.c.bf16 %v892_v39, %v891_v31  ;;  %v740_v49 = vpop.f32.mrf.mxu1  ;;  %v841_v50 = vmax.f32 %v607_v36, 0.0 }
 0x114   : > { %1230 = vst [vmem:[%s1905_s27 + $0x18] sm:$0xff] %v1501_v41  ;;  %v842_v51 = vmax.f32 %v609_v42, 0.0  ;;  %v611_v52 = vadd.f32 %v610_v45, %v1890_v43  ;;  %v741_v53 = vadd.f32 %v740_v49, %v1890_v43  ;;  %v894_v55 = vmax.f32 %v739_v48, 0.0 }
 0x115   : > { %1256 = vst [vmem:[%s1905_s27 + $0xe8] sm:$0xff] %v1527_v46  ;;  %v612_v54 = vpop.f32.mrf.mxu0  ;;  %v742_v56 = vpop.f32.mrf.mxu1 }
 0x116   : > { %v1502_v57 = vpack.c.bf16 %v842_v51, %v841_v50  ;;  %v613_v58 = vadd.f32 %v612_v54, %v1893_v44  ;;  %v1528_v60 = vpack.c.bf16 %v894_v55, %v893_v47  ;;  %v895_v61 = vmax.f32 %v741_v53, 0.0 }
 0x117   : > { %v616_v59 = vpop.f32.mrf.mxu0  ;;  %v743_v62 = vadd.f32 %v742_v56, %v1893_v44  ;;  %v746_v63 = vpop.f32.mrf.mxu1  ;;  %v843_v0 = vmax.f32 %v611_v52, 0.0 }
 0x118   : > { %1231 = vst [vmem:[%s1905_s27 + $0x20] sm:$0xff] %v1502_v57  ;;  %v844_v1 = vmax.f32 %v613_v58, 0.0  ;;  %v617_v2 = vadd.f32 %v616_v59, %v1890_v43  ;;  %v747_v3 = vadd.f32 %v746_v63, %v1890_v43  ;;  %1257 = vst [vmem:[%s1905_s27 + $0xf0] sm:$0xff] %v1528_v60 }
 0x119   : > { %v618_v4 = vpop.f32.mrf.mxu0  ;;  %v896_v5 = vmax.f32 %v743_v62, 0.0  ;;  %v748_v6 = vpop.f32.mrf.mxu1 }
 0x11a   : > { %v1503_v7 = vpack.c.bf16 %v844_v1, %v843_v0  ;;  %v619_v8 = vadd.f32 %v618_v4, %v1893_v44  ;;  %v897_v11 = vmax.f32 %v747_v3, 0.0  ;;  %v749_v12 = vadd.f32 %v748_v6, %v1893_v44 }
 0x11b   : > { %v620_v9 = vpop.f32.mrf.mxu0  ;;  %v1529_v10 = vpack.c.bf16 %v896_v5, %v895_v61  ;;  %v750_v13 = vpop.f32.mrf.mxu1  ;;  %v845_v14 = vmax.f32 %v617_v2, 0.0 }
 0x11c   : > { %1232 = vst [vmem:[%s1905_s27 + $0x28] sm:$0xff] %v1503_v7  ;;  %v846_v15 = vmax.f32 %v619_v8, 0.0  ;;  %v621_v16 = vadd.f32 %v620_v9, %v1890_v43  ;;  %v751_v17 = vadd.f32 %v750_v13, %v1890_v43  ;;  %v898_v19 = vmax.f32 %v749_v12, 0.0 }
 0x11d   : > { %1258 = vst [vmem:[%s1905_s27 + $0xf8] sm:$0xff] %v1529_v10  ;;  %v622_v18 = vpop.f32.mrf.mxu0  ;;  %v752_v20 = vpop.f32.mrf.mxu1 }
 0x11e   : > { %v1504_v21 = vpack.c.bf16 %v846_v15, %v845_v14  ;;  %v623_v22 = vadd.f32 %v622_v18, %v1893_v44  ;;  %v1530_v24 = vpack.c.bf16 %v898_v19, %v897_v11  ;;  %v899_v25 = vmax.f32 %v751_v17, 0.0 }
 0x11f   : > { %v626_v23 = vpop.f32.mrf.mxu0  ;;  %v753_v26 = vadd.f32 %v752_v20, %v1893_v44  ;;  %v756_v27 = vpop.f32.mrf.mxu1  ;;  %v847_v28 = vmax.f32 %v621_v16, 0.0 }
 0x120   : > { %1233 = vst [vmem:[%s1905_s27 + $0x30] sm:$0xff] %v1504_v21  ;;  %v848_v29 = vmax.f32 %v623_v22, 0.0  ;;  %v627_v30 = vadd.f32 %v626_v23, %v1890_v43  ;;  %v757_v31 = vadd.f32 %v756_v27, %v1890_v43  ;;  %1259 = vst [vmem:[%s1905_s27 + $0x100] sm:$0xff] %v1530_v24 }
 0x121   : > { %v628_v32 = vpop.f32.mrf.mxu0  ;;  %v900_v33 = vmax.f32 %v753_v26, 0.0  ;;  %v758_v34 = vpop.f32.mrf.mxu1 }
 0x122   : > { %v1505_v35 = vpack.c.bf16 %v848_v29, %v847_v28  ;;  %v629_v36 = vadd.f32 %v628_v32, %v1893_v44  ;;  %v901_v39 = vmax.f32 %v757_v31, 0.0  ;;  %v759_v40 = vadd.f32 %v758_v34, %v1893_v44 }
 0x123   : > { %v630_v37 = vpop.f32.mrf.mxu0  ;;  %v1531_v38 = vpack.c.bf16 %v900_v33, %v899_v25  ;;  %v760_v41 = vpop.f32.mrf.mxu1  ;;  %v849_v42 = vmax.f32 %v627_v30, 0.0 }
 0x124   : > { %1234 = vst [vmem:[%s1905_s27 + $0x38] sm:$0xff] %v1505_v35  ;;  %v850_v45 = vmax.f32 %v629_v36, 0.0  ;;  %v631_v46 = vadd.f32 %v630_v37, %v1890_v43  ;;  %v761_v47 = vadd.f32 %v760_v41, %v1890_v43  ;;  %v902_v49 = vmax.f32 %v759_v40, 0.0 }
 0x125   : > { %1260 = vst [vmem:[%s1905_s27 + $0x108] sm:$0xff] %v1531_v38  ;;  %v632_v48 = vpop.f32.mrf.mxu0  ;;  %v762_v50 = vpop.f32.mrf.mxu1 }
 0x126   : > { %v1506_v51 = vpack.c.bf16 %v850_v45, %v849_v42  ;;  %v633_v52 = vadd.f32 %v632_v48, %v1893_v44  ;;  %v1532_v54 = vpack.c.bf16 %v902_v49, %v901_v39  ;;  %v903_v55 = vmax.f32 %v761_v47, 0.0 }
 0x127   : > { %v636_v53 = vpop.f32.mrf.mxu0  ;;  %v763_v56 = vadd.f32 %v762_v50, %v1893_v44  ;;  %v766_v57 = vpop.f32.mrf.mxu1  ;;  %v851_v58 = vmax.f32 %v631_v46, 0.0 }
 0x128   : > { %1235 = vst [vmem:[%s1905_s27 + $0x40] sm:$0xff] %v1506_v51  ;;  %v852_v59 = vmax.f32 %v633_v52, 0.0  ;;  %v637_v60 = vadd.f32 %v636_v53, %v1890_v43  ;;  %v767_v61 = vadd.f32 %v766_v57, %v1890_v43  ;;  %1261 = vst [vmem:[%s1905_s27 + $0x110] sm:$0xff] %v1532_v54 }
 0x129   : > { %v638_v62 = vpop.f32.mrf.mxu0  ;;  %v904_v63 = vmax.f32 %v763_v56, 0.0  ;;  %v768_v0 = vpop.f32.mrf.mxu1 }
 0x12a   : > { %v1507_v1 = vpack.c.bf16 %v852_v59, %v851_v58  ;;  %v639_v2 = vadd.f32 %v638_v62, %v1893_v44  ;;  %v905_v5 = vmax.f32 %v767_v61, 0.0  ;;  %v769_v6 = vadd.f32 %v768_v0, %v1893_v44 }
 0x12b   : > { %v640_v3 = vpop.f32.mrf.mxu0  ;;  %v1533_v4 = vpack.c.bf16 %v904_v63, %v903_v55  ;;  %v770_v7 = vpop.f32.mrf.mxu1  ;;  %v853_v8 = vmax.f32 %v637_v60, 0.0 }
 0x12c   : > { %1236 = vst [vmem:[%s1905_s27 + $0x48] sm:$0xff] %v1507_v1  ;;  %v854_v9 = vmax.f32 %v639_v2, 0.0  ;;  %v641_v10 = vadd.f32 %v640_v3, %v1890_v43  ;;  %v771_v11 = vadd.f32 %v770_v7, %v1890_v43  ;;  %v906_v13 = vmax.f32 %v769_v6, 0.0 }
 0x12d   : > { %1262 = vst [vmem:[%s1905_s27 + $0x118] sm:$0xff] %v1533_v4  ;;  %v642_v12 = vpop.f32.mrf.mxu0  ;;  %v772_v14 = vpop.f32.mrf.mxu1 }
 0x12e   : > { %v1508_v15 = vpack.c.bf16 %v854_v9, %v853_v8  ;;  %v643_v16 = vadd.f32 %v642_v12, %v1893_v44  ;;  %v1534_v18 = vpack.c.bf16 %v906_v13, %v905_v5  ;;  %v907_v19 = vmax.f32 %v771_v11, 0.0 }
 0x12f   : > { %v646_v17 = vpop.f32.mrf.mxu0  ;;  %v773_v20 = vadd.f32 %v772_v14, %v1893_v44  ;;  %v776_v21 = vpop.f32.mrf.mxu1  ;;  %v855_v22 = vmax.f32 %v641_v10, 0.0 }
 0x130   : > { %1237 = vst [vmem:[%s1905_s27 + $0x50] sm:$0xff] %v1508_v15  ;;  %v856_v23 = vmax.f32 %v643_v16, 0.0  ;;  %v647_v24 = vadd.f32 %v646_v17, %v1890_v43  ;;  %v777_v25 = vadd.f32 %v776_v21, %v1890_v43  ;;  %1263 = vst [vmem:[%s1905_s27 + $0x120] sm:$0xff] %v1534_v18 }
 0x131   : > { %v648_v26 = vpop.f32.mrf.mxu0  ;;  %v908_v27 = vmax.f32 %v773_v20, 0.0  ;;  %v778_v28 = vpop.f32.mrf.mxu1 }
 0x132   : > { %v1509_v29 = vpack.c.bf16 %v856_v23, %v855_v22  ;;  %v649_v30 = vadd.f32 %v648_v26, %v1893_v44  ;;  %v909_v33 = vmax.f32 %v777_v25, 0.0  ;;  %v779_v34 = vadd.f32 %v778_v28, %v1893_v44 }
 0x133   : > { %v650_v31 = vpop.f32.mrf.mxu0  ;;  %v1535_v32 = vpack.c.bf16 %v908_v27, %v907_v19  ;;  %v780_v35 = vpop.f32.mrf.mxu1  ;;  %v857_v36 = vmax.f32 %v647_v24, 0.0 }
 0x134   : > { %1238 = vst [vmem:[%s1905_s27 + $0x58] sm:$0xff] %v1509_v29  ;;  %v858_v37 = vmax.f32 %v649_v30, 0.0  ;;  %v651_v38 = vadd.f32 %v650_v31, %v1890_v43  ;;  %v781_v39 = vadd.f32 %v780_v35, %v1890_v43  ;;  %v910_v41 = vmax.f32 %v779_v34, 0.0 }
 0x135   : > { %1264 = vst [vmem:[%s1905_s27 + $0x128] sm:$0xff] %v1535_v32  ;;  %v652_v40 = vpop.f32.mrf.mxu0  ;;  %v782_v42 = vpop.f32.mrf.mxu1 }
 0x136   : > { %v1510_v45 = vpack.c.bf16 %v858_v37, %v857_v36  ;;  %v653_v46 = vadd.f32 %v652_v40, %v1893_v44  ;;  %v1536_v48 = vpack.c.bf16 %v910_v41, %v909_v33  ;;  %v911_v49 = vmax.f32 %v781_v39, 0.0 }
 0x137   : > { %v656_v47 = vpop.f32.mrf.mxu0  ;;  %v783_v50 = vadd.f32 %v782_v42, %v1893_v44  ;;  %v786_v51 = vpop.f32.mrf.mxu1  ;;  %v859_v52 = vmax.f32 %v651_v38, 0.0 }
 0x138   : > { %1239 = vst [vmem:[%s1905_s27 + $0x60] sm:$0xff] %v1510_v45  ;;  %v860_v53 = vmax.f32 %v653_v46, 0.0  ;;  %v657_v54 = vadd.f32 %v656_v47, %v1890_v43  ;;  %v787_v55 = vadd.f32 %v786_v51, %v1890_v43  ;;  %1265 = vst [vmem:[%s1905_s27 + $0x130] sm:$0xff] %v1536_v48 }
 0x139   : > { %v658_v56 = vpop.f32.mrf.mxu0  ;;  %v912_v57 = vmax.f32 %v783_v50, 0.0  ;;  %v788_v58 = vpop.f32.mrf.mxu1 }
 0x13a   : > { %v1511_v59 = vpack.c.bf16 %v860_v53, %v859_v52  ;;  %v659_v60 = vadd.f32 %v658_v56, %v1893_v44  ;;  %v913_v63 = vmax.f32 %v787_v55, 0.0  ;;  %v789_v0 = vadd.f32 %v788_v58, %v1893_v44 }
 0x13b   : > { %v660_v61 = vpop.f32.mrf.mxu0  ;;  %v1537_v62 = vpack.c.bf16 %v912_v57, %v911_v49  ;;  %v790_v1 = vpop.f32.mrf.mxu1  ;;  %v861_v2 = vmax.f32 %v657_v54, 0.0 }
 0x13c   : > { %1240 = vst [vmem:[%s1905_s27 + $0x68] sm:$0xff] %v1511_v59  ;;  %v862_v3 = vmax.f32 %v659_v60, 0.0  ;;  %v661_v4 = vadd.f32 %v660_v61, %v1890_v43  ;;  %v791_v5 = vadd.f32 %v790_v1, %v1890_v43  ;;  %v914_v7 = vmax.f32 %v789_v0, 0.0 }
 0x13d   : > { %1266 = vst [vmem:[%s1905_s27 + $0x138] sm:$0xff] %v1537_v62  ;;  %v662_v6 = vpop.f32.mrf.mxu0  ;;  %v792_v8 = vpop.f32.mrf.mxu1 }
 0x13e   : > { %v1512_v9 = vpack.c.bf16 %v862_v3, %v861_v2  ;;  %v663_v10 = vadd.f32 %v662_v6, %v1893_v44  ;;  %v1538_v12 = vpack.c.bf16 %v914_v7, %v913_v63  ;;  %v915_v13 = vmax.f32 %v791_v5, 0.0 }
 0x13f   : > { %v666_v11 = vpop.f32.mrf.mxu0  ;;  %v793_v14 = vadd.f32 %v792_v8, %v1893_v44  ;;  %v796_v15 = vpop.f32.mrf.mxu1  ;;  %v863_v16 = vmax.f32 %v661_v4, 0.0 }
 0x140   : > { %1241 = vst [vmem:[%s1905_s27 + $0x70] sm:$0xff] %v1512_v9  ;;  %v864_v17 = vmax.f32 %v663_v10, 0.0  ;;  %v667_v18 = vadd.f32 %v666_v11, %v1890_v43  ;;  %v797_v19 = vadd.f32 %v796_v15, %v1890_v43  ;;  %1267 = vst [vmem:[%s1905_s27 + $0x140] sm:$0xff] %v1538_v12 }
 0x141   : > { %v668_v20 = vpop.f32.mrf.mxu0  ;;  %v916_v21 = vmax.f32 %v793_v14, 0.0  ;;  %v798_v22 = vpop.f32.mrf.mxu1 }
 0x142   : > { %v1513_v23 = vpack.c.bf16 %v864_v17, %v863_v16  ;;  %v669_v24 = vadd.f32 %v668_v20, %v1893_v44  ;;  %v917_v27 = vmax.f32 %v797_v19, 0.0  ;;  %v799_v28 = vadd.f32 %v798_v22, %v1893_v44 }
 0x143   : > { %v670_v25 = vpop.f32.mrf.mxu0  ;;  %v1539_v26 = vpack.c.bf16 %v916_v21, %v915_v13  ;;  %v800_v29 = vpop.f32.mrf.mxu1  ;;  %v865_v30 = vmax.f32 %v667_v18, 0.0 }
 0x144   : > { %1242 = vst [vmem:[%s1905_s27 + $0x78] sm:$0xff] %v1513_v23  ;;  %v866_v31 = vmax.f32 %v669_v24, 0.0  ;;  %v671_v32 = vadd.f32 %v670_v25, %v1890_v43  ;;  %v801_v33 = vadd.f32 %v800_v29, %v1890_v43  ;;  %v918_v35 = vmax.f32 %v799_v28, 0.0 }
 0x145   : > { %1268 = vst [vmem:[%s1905_s27 + $0x148] sm:$0xff] %v1539_v26  ;;  %v672_v34 = vpop.f32.mrf.mxu0  ;;  %v802_v36 = vpop.f32.mrf.mxu1 }
 0x146   : > { %v1514_v37 = vpack.c.bf16 %v866_v31, %v865_v30  ;;  %v673_v38 = vadd.f32 %v672_v34, %v1893_v44  ;;  %v1540_v40 = vpack.c.bf16 %v918_v35, %v917_v27  ;;  %v919_v41 = vmax.f32 %v801_v33, 0.0 }
 0x147   : > { %v676_v39 = vpop.f32.mrf.mxu0  ;;  %v803_v42 = vadd.f32 %v802_v36, %v1893_v44  ;;  %v806_v45 = vpop.f32.mrf.mxu1  ;;  %v867_v46 = vmax.f32 %v671_v32, 0.0 }
 0x148   : > { %1243 = vst [vmem:[%s1905_s27 + $0x80] sm:$0xff] %v1514_v37  ;;  %v868_v47 = vmax.f32 %v673_v38, 0.0  ;;  %v677_v48 = vadd.f32 %v676_v39, %v1890_v43  ;;  %v807_v49 = vadd.f32 %v806_v45, %v1890_v43  ;;  %1269 = vst [vmem:[%s1905_s27 + $0x150] sm:$0xff] %v1540_v40 }
 0x149   : > { %v678_v50 = vpop.f32.mrf.mxu0  ;;  %v920_v51 = vmax.f32 %v803_v42, 0.0  ;;  %v808_v52 = vpop.f32.mrf.mxu1 }
 0x14a   : > { %v1515_v53 = vpack.c.bf16 %v868_v47, %v867_v46  ;;  %v679_v54 = vadd.f32 %v678_v50, %v1893_v44  ;;  %v921_v57 = vmax.f32 %v807_v49, 0.0  ;;  %v809_v58 = vadd.f32 %v808_v52, %v1893_v44 }
 0x14b   : > { %v680_v55 = vpop.f32.mrf.mxu0  ;;  %v1541_v56 = vpack.c.bf16 %v920_v51, %v919_v41  ;;  %v810_v59 = vpop.f32.mrf.mxu1  ;;  %v869_v60 = vmax.f32 %v677_v48, 0.0 }
 0x14c   : > { %1244 = vst [vmem:[%s1905_s27 + $0x88] sm:$0xff] %v1515_v53  ;;  %v870_v61 = vmax.f32 %v679_v54, 0.0  ;;  %v681_v62 = vadd.f32 %v680_v55, %v1890_v43  ;;  %v811_v63 = vadd.f32 %v810_v59, %v1890_v43  ;;  %v922_v1 = vmax.f32 %v809_v58, 0.0 }
 0x14d   : > { %1270 = vst [vmem:[%s1905_s27 + $0x158] sm:$0xff] %v1541_v56  ;;  %v682_v0 = vpop.f32.mrf.mxu0  ;;  %v812_v2 = vpop.f32.mrf.mxu1 }
 0x14e   : > { %v1516_v3 = vpack.c.bf16 %v870_v61, %v869_v60  ;;  %v683_v4 = vadd.f32 %v682_v0, %v1893_v44  ;;  %v1542_v6 = vpack.c.bf16 %v922_v1, %v921_v57  ;;  %v923_v7 = vmax.f32 %v811_v63, 0.0 }
 0x14f   : > { %v686_v5 = vpop.f32.mrf.mxu0  ;;  %v813_v8 = vadd.f32 %v812_v2, %v1893_v44  ;;  %v816_v9 = vpop.f32.mrf.mxu1  ;;  %v871_v10 = vmax.f32 %v681_v62, 0.0 }
 0x150   : > { %1245 = vst [vmem:[%s1905_s27 + $0x90] sm:$0xff] %v1516_v3  ;;  %v872_v11 = vmax.f32 %v683_v4, 0.0  ;;  %v687_v12 = vadd.f32 %v686_v5, %v1890_v43  ;;  %v817_v13 = vadd.f32 %v816_v9, %v1890_v43  ;;  %1271 = vst [vmem:[%s1905_s27 + $0x160] sm:$0xff] %v1542_v6 }
 0x151   : > { %v688_v14 = vpop.f32.mrf.mxu0  ;;  %v924_v15 = vmax.f32 %v813_v8, 0.0  ;;  %v818_v16 = vpop.f32.mrf.mxu1 }
 0x152   : > { %v1517_v17 = vpack.c.bf16 %v872_v11, %v871_v10  ;;  %v689_v18 = vadd.f32 %v688_v14, %v1893_v44  ;;  %v925_v21 = vmax.f32 %v817_v13, 0.0  ;;  %v819_v22 = vadd.f32 %v818_v16, %v1893_v44 }
 0x153   : > { %v690_v19 = vpop.f32.mrf.mxu0  ;;  %v1543_v20 = vpack.c.bf16 %v924_v15, %v923_v7  ;;  %v820_v23 = vpop.f32.mrf.mxu1  ;;  %v873_v24 = vmax.f32 %v687_v12, 0.0 }
 0x154   : > { %1246 = vst [vmem:[%s1905_s27 + $0x98] sm:$0xff] %v1517_v17  ;;  %v874_v25 = vmax.f32 %v689_v18, 0.0  ;;  %v691_v26 = vadd.f32 %v690_v19, %v1890_v43  ;;  %v821_v27 = vadd.f32 %v820_v23, %v1890_v43  ;;  %v926_v29 = vmax.f32 %v819_v22, 0.0 }
 0x155   : > { %1272 = vst [vmem:[%s1905_s27 + $0x168] sm:$0xff] %v1543_v20  ;;  %v692_v28 = vpop.f32.mrf.mxu0  ;;  %v822_v30 = vpop.f32.mrf.mxu1 }
 0x156   : > { %v1518_v31 = vpack.c.bf16 %v874_v25, %v873_v24  ;;  %v693_v32 = vadd.f32 %v692_v28, %v1893_v44  ;;  %v1544_v34 = vpack.c.bf16 %v926_v29, %v925_v21  ;;  %v927_v35 = vmax.f32 %v821_v27, 0.0 }
 0x157   : > { %v696_v33 = vpop.f32.mrf.mxu0  ;;  %v823_v36 = vadd.f32 %v822_v30, %v1893_v44  ;;  %v826_v37 = vpop.f32.mrf.mxu1  ;;  %v875_v38 = vmax.f32 %v691_v26, 0.0 }
 0x158   : > { %1247 = vst [vmem:[%s1905_s27 + $0xa0] sm:$0xff] %v1518_v31  ;;  %v876_v39 = vmax.f32 %v693_v32, 0.0  ;;  %v697_v40 = vadd.f32 %v696_v33, %v1890_v43  ;;  %v827_v41 = vadd.f32 %v826_v37, %v1890_v43  ;;  %1273 = vst [vmem:[%s1905_s27 + $0x170] sm:$0xff] %v1544_v34 }
 0x159   : > { %v698_v42 = vpop.f32.mrf.mxu0  ;;  %v928_v45 = vmax.f32 %v823_v36, 0.0  ;;  %v828_v46 = vpop.f32.mrf.mxu1 }
 0x15a   : > { %v1519_v47 = vpack.c.bf16 %v876_v39, %v875_v38  ;;  %v699_v48 = vadd.f32 %v698_v42, %v1893_v44  ;;  %v929_v51 = vmax.f32 %v827_v41, 0.0  ;;  %v829_v52 = vadd.f32 %v828_v46, %v1893_v44 }
 0x15b   : > { %v700_v49 = vpop.f32.mrf.mxu0  ;;  %v1545_v50 = vpack.c.bf16 %v928_v45, %v927_v35  ;;  %v830_v53 = vpop.f32.mrf.mxu1  ;;  %v877_v54 = vmax.f32 %v697_v40, 0.0 }
 0x15c   : > { %1248 = vst [vmem:[%s1905_s27 + $0xa8] sm:$0xff] %v1519_v47  ;;  %v878_v55 = vmax.f32 %v699_v48, 0.0  ;;  %v701_v56 = vadd.f32 %v700_v49, %v1890_v43  ;;  %v930_v58 = vmax.f32 %v829_v52, 0.0 }
 0x15d   : > { %1274 = vst [vmem:[%s1905_s27 + $0x178] sm:$0xff] %v1545_v50  ;;  %v702_v57 = vpop.f32.mrf.mxu0  ;;  %v831_v59 = vpop.f32.mrf.mxu1 }
 0x15e   : > { %v1520_v60 = vpack.c.bf16 %v878_v55, %v877_v54  ;;  %v703_v61 = vadd.f32 %v702_v57, %v1893_v44  ;;  %v1546_v63 = vpack.c.bf16 %v930_v58, %v929_v51  ;;  %v879_v0 = vmax.f32 %v701_v56, 0.0 }
 0x15f   : > { %v706_v62 = vpop.f32.mrf.mxu0 }
 0x160   : > { %1249 = vst [vmem:[%s1905_s27 + $0xb0] sm:$0xff] %v1520_v60  ;;  %v880_v1 = vmax.f32 %v703_v61, 0.0  ;;  %v707_v2 = vadd.f32 %v706_v62, %v1890_v43  ;;  %1275 = vst [vmem:[%s1905_s27 + $0x180] sm:$0xff] %v1546_v63 }
 0x161   : > { %v708_v3 = vpop.f32.mrf.mxu0 }
 0x162   : > { %v1521_v4 = vpack.c.bf16 %v880_v1, %v879_v0  ;;  %v709_v5 = vadd.f32 %v708_v3, %v1893_v44  ;;  %v881_v7 = vmax.f32 %v707_v2, 0.0 }
 0x163   : > { %v710_v6 = vpop.f32.mrf.mxu0 }
 0x164   : > { %1250 = vst [vmem:[%s1905_s27 + $0xb8] sm:$0xff] %v1521_v4  ;;  %v882_v8 = vmax.f32 %v709_v5, 0.0  ;;  %v711_v9 = vadd.f32 %v710_v6, %v1890_v43 }
 0x165   : > { %v712_v10 = vpop.f32.mrf.mxu0 }
 0x166   : > { %v1522_v11 = vpack.c.bf16 %v882_v8, %v881_v7  ;;  %v713_v12 = vadd.f32 %v712_v10, %v1893_v44  ;;  %v883_v13 = vmax.f32 %v711_v9, 0.0 }
 0x168   : > { %1251 = vst [vmem:[%s1905_s27 + $0xc0] sm:$0xff] %v1522_v11  ;;  %v884_v14 = vmax.f32 %v713_v12, 0.0 }
 0x16a   : > { %v1523_v43 = vpack.c.bf16 %v884_v14, %v883_v13 }
 0x16c   : > { %1252 = vst [vmem:[%s1905_s27 + $0xc8] sm:$0xff] %v1523_v43 }
 0x16d   : > { %1669 = shalt.err (!%p1666_p12)
}
 0x16e   : > { %s1670_s14 = scalar_lea.hbm %s2050_s9, 6272  ;;  %s1674_s17 = scalar_lea.hbm %s2101_s4, 12544 }
 0x16f   : > { %p1671_p13 = scmp.ne.s32.totalorder %s2050_s9, %s1670_s14  ;;  %p1675_p2 = scmp.lt.s32.totalorder %s2050_s9, %s2101_s4 }
 0x170   : > { %p1676_p3 = scmp.lt.s32.totalorder %s1674_s17, %s1670_s14 }
 0x171   : > { %p1672_p0 = pnand %p1671_p13, %p1791_p10 }
 0x172   : > { %p1677_p4 = por %p1676_p3, %p1675_p2 }
 0x173   : > { %p1673_p1 = pneg %p1672_p0 }
 0x175   : > { %p1678_p5 = pnand %p1677_p4, %p1673_p1 }
 0x177   : > { %1681 = shalt.err (!%p1678_p5)
}
 0x178   : > { %s1723_s24 = smov 128   ;;  %s1724_s26 = smov 8  }
 0x179   : > { %1562 = dma.vmem_to_hbm [thread:$0]  (%p1791_p10), %s2052_s6, 6272, %s2050_s9, %s2057_s23, %s1723_s24, %s1723_s24, %s1724_s26  }
 0x17a PF: > { %p1568_p6 = scmp.ge.s32.totalorder %s1718_s22, 2  ;;  %s1306_s27 = sand.u32 1, %s1706_s20  }
 0x17b   : > { %s1307_s5 = scalar_lea.sflag [#allocation5], %s1306_s27 }
 0x17c   : > { %p1565_p7 = pnand %p1568_p6, %p1795_p11 }
 0x17e   : > { %p1566_p8 = pneg %p1565_p7 }
 0x180   : > { %1701 = dma.done.wait (%p1566_p8), %s1307_s5, 6272  }
 0x181   : > { %1703 = vsyncadd (%p1566_p8), %s1307_s5, 4294961024  ;;  %p20_p9 = scmp.ge.s32.totalorder %s1778_s25, 4   ;;  %s2104_s20 = smov %s1710_s21 }
 0x182   : > { %s2105_s21 = smov %s1714_s0  ;;  %s2106_s0 = smov %s1789_s28 }
 0x183   : > { %s2107_s22 = smov %s1778_s25  ;;  %22 = sbr.rel (!%p20_p9) target bundleno = 18 (0x12), region = 73 }
 0x188   :  { %1312 = vsyncpa [#allocation5], 1 }
 0x189   :  { %1314 = vsyncpa [#allocation5 + $0x1], 1 }

</bundles_post_ra>
